<compile_context>
chip_gen: v7x
topology: tpu7x:2x2x1
jax: 0.10.0
libtpu: 0.0.40
codegen_flags: <defaults>
</compile_context>

<pallas_src>
import jax
import jax.numpy as jnp
from jax.experimental import pallas as pl
from jax.experimental.pallas import tpu as pltpu

_LANE = 128


def net_kernel(xp_ref, w1_ref, b1_ref, w2_ref, b2_ref, out_ref):
    # xp_ref : (4, TB, 768)  -- 4 candidate values per 2x2 max-pool window (leading axis)
    # w1_ref : (768, 128)    b1_ref : (1, 128)   (lane-padded with zeros)
    # w2_ref : (128, 128)    b2_ref : (1, 128)   (lane/row-padded with zeros)
    # out_ref: (TB, 128)
    pooled = jnp.maximum(jnp.maximum(xp_ref[0], xp_ref[1]),
                         jnp.maximum(xp_ref[2], xp_ref[3]))        # VPU max tree -> (TB, 768)
    h = jnp.dot(pooled, w1_ref[...],
                preferred_element_type=jnp.float32) + b1_ref[...]  # MXU
    h = jnp.maximum(h, 0.0)                                        # ReLU
    out = jnp.dot(h, w2_ref[...],
                  preferred_element_type=jnp.float32) + b2_ref[...]
    out_ref[...] = out.astype(out_ref.dtype)


def _round_up(n, m):
    return ((n + m - 1) // m) * m


def _net_forward_impl(x, w1, b1, w2, b2):
    """x: (B, 3, 32, 32) NCHW f32.  w1: (768, 64), b1: (64,), w2: (64, 10), b2: (10,)."""
    B, C, H, W = x.shape
    Hp, Wp = H // 2, W // 2
    D = C * Hp * Wp                      # 768, multiple of 128
    N1 = w1.shape[1]                     # 64
    N2 = w2.shape[1]                     # 10
    N1p = _round_up(N1, _LANE)           # 128
    N2p = _round_up(N2, _LANE)           # 128

    # --- layout glue only (no arithmetic): 2x2 pool candidates on the LEADING axis ---
    # feature index stays C-major (c*256 + i*16 + j), matching torch .view(-1, 768).
    xp = x.reshape(B, C, Hp, 2, Wp, 2)          # (b, c, i, a, j, bw), h=2i+a, w=2j+bw
    xp = xp.transpose(3, 5, 0, 1, 2, 4)         # (a, bw, b, c, i, j)
    xp = xp.reshape(4, B, D)                    # (4, B, 768)

    # --- batch tiling: TB capped at 256 (fits v5e 16 MiB scoped VMEM, fine on v6e/v7x) ---
    b_pad8 = _round_up(B, 8)
    tb = min(256, b_pad8)
    B_pad = _round_up(B, tb)
    if B_pad != B:
        xp = jnp.pad(xp, ((0, 0), (0, B_pad - B), (0, 0)))

    # --- lane-pad parameters with zeros (keeps first N2 outputs exact) ---
    w1p = jnp.pad(w1, ((0, 0), (0, N1p - N1)))
    b1p = jnp.pad(b1, (0, N1p - N1)).reshape(1, N1p)
    w2p = jnp.pad(w2, ((0, N1p - N1), (0, N2p - N2)))
    b2p = jnp.pad(b2, (0, N2p - N2)).reshape(1, N2p)

    grid = (B_pad // tb,)
    out = pl.pallas_call(
        net_kernel,
        out_shape=jax.ShapeDtypeStruct((B_pad, N2p), jnp.float32),
        grid=grid,
        in_specs=[
            pl.BlockSpec((4, tb, D), lambda i: (0, i, 0)),     # activations: batch-tiled
            pl.BlockSpec((D, N1p), lambda i: (0, 0)),          # weights resident
            pl.BlockSpec((1, N1p), lambda i: (0, 0)),
            pl.BlockSpec((N1p, N2p), lambda i: (0, 0)),
            pl.BlockSpec((1, N2p), lambda i: (0, 0)),
        ],
        out_specs=pl.BlockSpec((tb, N2p), lambda i: (i, 0)),   # lane-dense (TB, 128) output
        compiler_params=pltpu.CompilerParams(
            dimension_semantics=("parallel",),
            # let XLA fuse the reshape/transpose glue into the input DMA of operand 0
            allow_input_fusion=[True, False, False, False, False],
        ),
    )(xp, w1p, b1p, w2p, b2p)

    return out[:B, :N2]


net_forward = jax.jit(_net_forward_impl)


def reference_forward(x, w1, b1, w2, b2):
    """Pure-JAX reference mirroring the PyTorch forward."""
    B = x.shape[0]
    p = jax.lax.reduce_window(
        x, -jnp.inf, jax.lax.max,
        window_dimensions=(1, 1, 2, 2), window_strides=(1, 1, 2, 2),
        padding="VALID")
    flat = p.reshape(B, -1)
    h = jnp.maximum(flat @ w1 + b1, 0.0)
    return h @ w2 + b2


if __name__ == "__main__":
    key = jax.random.PRNGKey(0)
    kx, k1, k2, k3, k4 = jax.random.split(key, 5)

    B, C, H, W = 2, 3, 32, 32          # pool(2,2) -> (B, 3, 16, 16) -> 768 features
    x = jax.random.normal(kx, (B, C, H, W), dtype=jnp.float32)

    # Parameters (PyTorch Linear stores (out,in); kept pre-transposed as (in,out)).
    w1 = (jax.random.uniform(k1, (3 * 16 * 16, 64), jnp.float32, -1.0, 1.0)
          / jnp.sqrt(3.0 * 16 * 16))
    b1 = jax.random.uniform(k2, (64,), jnp.float32, -0.05, 0.05)
    w2 = jax.random.uniform(k3, (64, 10), jnp.float32, -1.0, 1.0) / jnp.sqrt(64.0)
    b2 = jax.random.uniform(k4, (10,), jnp.float32, -0.1, 0.1)

    out = net_forward(x, w1, b1, w2, b2)
    out = jax.block_until_ready(out)

    ref = reference_forward(x, w1, b1, w2, b2)
    assert out.shape == (B, 10)
    assert jnp.allclose(out, ref, atol=1e-4, rtol=1e-4), "mismatch vs reference"

    print("KERNEL_OK")
</pallas_src>

<mosaic_0001>
module attributes {stable_mosaic.version = 11 : i64} {
  func.func @net_kernel(%arg0: i32, %arg1: memref<4x8x768xf32, #tpu.memory_space<vmem>>, %arg2: memref<768x128xf32, #tpu.memory_space<vmem>>, %arg3: memref<1x128xf32, #tpu.memory_space<vmem>>, %arg4: memref<128x128xf32, #tpu.memory_space<vmem>>, %arg5: memref<1x128xf32, #tpu.memory_space<vmem>>, %arg6: memref<8x128xf32, #tpu.memory_space<vmem>>) attributes {dimension_semantics = [#tpu.dimension_semantics<parallel>], iteration_bounds = array<i64: 1>, scalar_prefetch = 0 : i64, scratch_operands = 0 : i64, tpu.core_type = #tpu.core_type<tc>, window_params = [{transform_indices = @transform_0, window_bounds = array<i64: 4, 8, 768>}, {pipeline_mode = #tpu.pipeline_mode<synchronous>, transform_indices = @transform_1, window_bounds = array<i64: 768, 128>}, {pipeline_mode = #tpu.pipeline_mode<synchronous>, transform_indices = @transform_2, window_bounds = array<i64: 1, 128>}, {pipeline_mode = #tpu.pipeline_mode<synchronous>, transform_indices = @transform_3, window_bounds = array<i64: 128, 128>}, {pipeline_mode = #tpu.pipeline_mode<synchronous>, transform_indices = @transform_4, window_bounds = array<i64: 1, 128>}, {transform_indices = @transform_5, window_bounds = array<i64: 8, 128>}]} {
    %c0 = arith.constant 0 : index
    %c0_0 = arith.constant 0 : index
    %c0_1 = arith.constant 0 : index
    %0 = vector.load %arg1[%c0, %c0_0, %c0_1] : memref<4x8x768xf32, #tpu.memory_space<vmem>>, vector<1x8x768xf32>
    %1 = vector.shape_cast %0 : vector<1x8x768xf32> to vector<8x768xf32>
    %c1 = arith.constant 1 : index
    %c0_2 = arith.constant 0 : index
    %c0_3 = arith.constant 0 : index
    %2 = vector.load %arg1[%c1, %c0_2, %c0_3] : memref<4x8x768xf32, #tpu.memory_space<vmem>>, vector<1x8x768xf32>
    %3 = vector.shape_cast %2 : vector<1x8x768xf32> to vector<8x768xf32>
    %4 = arith.maximumf %1, %3 : vector<8x768xf32>
    %c2 = arith.constant 2 : index
    %c0_4 = arith.constant 0 : index
    %c0_5 = arith.constant 0 : index
    %5 = vector.load %arg1[%c2, %c0_4, %c0_5] : memref<4x8x768xf32, #tpu.memory_space<vmem>>, vector<1x8x768xf32>
    %6 = vector.shape_cast %5 : vector<1x8x768xf32> to vector<8x768xf32>
    %c3 = arith.constant 3 : index
    %c0_6 = arith.constant 0 : index
    %c0_7 = arith.constant 0 : index
    %7 = vector.load %arg1[%c3, %c0_6, %c0_7] : memref<4x8x768xf32, #tpu.memory_space<vmem>>, vector<1x8x768xf32>
    %8 = vector.shape_cast %7 : vector<1x8x768xf32> to vector<8x768xf32>
    %9 = arith.maximumf %6, %8 : vector<8x768xf32>
    %10 = arith.maximumf %4, %9 : vector<8x768xf32>
    %c0_8 = arith.constant 0 : index
    %c0_9 = arith.constant 0 : index
    %11 = vector.load %arg2[%c0_8, %c0_9] : memref<768x128xf32, #tpu.memory_space<vmem>>, vector<768x128xf32>
    %cst = arith.constant dense<0.000000e+00> : vector<8x128xf32>
    %12 = tpu.matmul %10, %11, %cst {dimension_numbers = #tpu.dot_dimension_numbers<[1], [0], [0], [1], [0, 0, 1, 1], [], []>} : vector<8x768xf32>, vector<768x128xf32>, vector<8x128xf32> -> vector<8x128xf32>
    %c0_10 = arith.constant 0 : index
    %c0_11 = arith.constant 0 : index
    %13 = vector.load %arg3[%c0_10, %c0_11] : memref<1x128xf32, #tpu.memory_space<vmem>>, vector<1x128xf32>
    %14 = vector.broadcast %13 : vector<1x128xf32> to vector<8x128xf32>
    %15 = arith.addf %12, %14 : vector<8x128xf32>
    %cst_12 = arith.constant 0.000000e+00 : f32
    %16 = vector.broadcast %cst_12 : f32 to vector<8x128xf32>
    %17 = arith.maximumf %15, %16 : vector<8x128xf32>
    %c0_13 = arith.constant 0 : index
    %c0_14 = arith.constant 0 : index
    %18 = vector.load %arg4[%c0_13, %c0_14] : memref<128x128xf32, #tpu.memory_space<vmem>>, vector<128x128xf32>
    %cst_15 = arith.constant dense<0.000000e+00> : vector<8x128xf32>
    %19 = tpu.matmul %17, %18, %cst_15 {dimension_numbers = #tpu.dot_dimension_numbers<[1], [0], [0], [1], [0, 0, 1, 1], [], []>} : vector<8x128xf32>, vector<128x128xf32>, vector<8x128xf32> -> vector<8x128xf32>
    %c0_16 = arith.constant 0 : index
    %c0_17 = arith.constant 0 : index
    %20 = vector.load %arg5[%c0_16, %c0_17] : memref<1x128xf32, #tpu.memory_space<vmem>>, vector<1x128xf32>
    %21 = vector.broadcast %20 : vector<1x128xf32> to vector<8x128xf32>
    %22 = arith.addf %19, %21 : vector<8x128xf32>
    %c0_18 = arith.constant 0 : index
    %c0_19 = arith.constant 0 : index
    %23 = vector.load %arg6[%c0_18, %c0_19] : memref<8x128xf32, #tpu.memory_space<vmem>>, vector<8x128xf32>
    tpu.vector_store %arg6[%c0_18, %c0_19], %22 {strides = array<i32>} : memref<8x128xf32, #tpu.memory_space<vmem>>, vector<8x128xf32>,
    return
  }
  func.func @transform_0(%arg0: i32) -> (i32, i32, i32) {
    %c0_i32 = arith.constant 0 : i32
    %c0_i32_0 = arith.constant 0 : i32
    %c0_i32_1 = arith.constant 0 : i32
    return %c0_i32, %arg0, %c0_i32_0 : i32, i32, i32
  }
  func.func @transform_1(%arg0: i32) -> (i32, i32) {
    %c0_i32 = arith.constant 0 : i32
    %c0_i32_0 = arith.constant 0 : i32
    %c0_i32_1 = arith.constant 0 : i32
    return %c0_i32, %c0_i32_0 : i32, i32
  }
  func.func @transform_2(%arg0: i32) -> (i32, i32) {
    %c0_i32 = arith.constant 0 : i32
    %c0_i32_0 = arith.constant 0 : i32
    %c0_i32_1 = arith.constant 0 : i32
    return %c0_i32, %c0_i32_0 : i32, i32
  }
  func.func @transform_3(%arg0: i32) -> (i32, i32) {
    %c0_i32 = arith.constant 0 : i32
    %c0_i32_0 = arith.constant 0 : i32
    %c0_i32_1 = arith.constant 0 : i32
    return %c0_i32, %c0_i32_0 : i32, i32
  }
  func.func @transform_4(%arg0: i32) -> (i32, i32) {
    %c0_i32 = arith.constant 0 : i32
    %c0_i32_0 = arith.constant 0 : i32
    %c0_i32_1 = arith.constant 0 : i32
    return %c0_i32, %c0_i32_0 : i32, i32
  }
  func.func @transform_5(%arg0: i32) -> (i32, i32) {
    %c0_i32 = arith.constant 0 : i32
    %c0_i32_0 = arith.constant 0 : i32
    return %arg0, %c0_i32 : i32, i32
  }
}

</mosaic_0001>

<bundles_post_ra>
// kernel: _net_forward_impl.2
= control target key start
LH: loop header
LB: loop body
LE: loop exit
PB: predicated region body
PF: predicated region fallthrough
CT: control target
= control target key end

     0   :  { %v23_v48 = vlaneseq  ;;  %vm1023_vm1 = vmmov 0   ;;  %s1587_s0 = inlined_call_operand.vmem [shape: f32[768,128], index: 0, kind: input, shape index: {}]   ;;  %s1588_s1 = inlined_call_operand.vmem [shape: f32[1,128], index: 1, kind: input, shape index: {}]   ;;  %s1589_s2 = inlined_call_operand.vmem [shape: f32[128,128], index: 2, kind: input, shape index: {}]   ;;  %s1590_s3 = inlined_call_operand.vmem [shape: f32[1,128], index: 3, kind: input, shape index: {}]   ;;  %s1591_s4 = inlined_call_operand.vmem [shape: f32[4,2,768], index: 4, kind: input, shape index: {}]   ;;  %s1592_s5 = inlined_call_operand.<no memory space> [shape: f32[], index: 5, kind: input, shape index: {}]   ;;  %s1593_s6 = inlined_call_operand.vmem [shape: f32[8,128], index: 6, kind: output, shape index: {}]  }
   0x1   :  { %v1063_v0 = vstv %s1592_s5  ;;  %v321_v1 = vld [vmem:[%s1587_s0 + $0x80] sm:$0xff]  ;;  %v322_v2 = vld [vmem:[%s1587_s0 + $0x88] sm:$0xff]  ;;  %v323_v12 = vld [vmem:[%s1587_s0 + $0x90] sm:$0xff] }
   0x2   :  { %v305_v3 = vld [vmem:[%s1587_s0] sm:$0xff]  ;;  %v899_v4 = vpack.c.bf16 %v322_v2, %v321_v1  ;;  %v306_v5 = vld [vmem:[%s1587_s0 + $0x8] sm:$0xff]  ;;  %v324_v14 = vld [vmem:[%s1587_s0 + $0x98] sm:$0xff]  ;;  %v1191_v62 = vshrl.u32 %v23_v48, 7 }
   0x3   :  { %v353_v6 = vld [vmem:[%s1587_s0 + $0x180] sm:$0xff]  ;;  %v354_v7 = vld [vmem:[%s1587_s0 + $0x188] sm:$0xff]  ;;  %v901_v8 = vpack.c.bf16 %v306_v5, %v305_v3  ;;  %v307_v15 = vld [vmem:[%s1587_s0 + $0x10] sm:$0xff]  ;;  %v903_v17 = vpack.c.bf16 %v324_v14, %v323_v12 }
   0x4   :  { %v931_v9 = vpack.c.bf16 %v354_v7, %v353_v6  ;;  %v337_v10 = vld [vmem:[%s1587_s0 + $0x100] sm:$0xff]  ;;  %v338_v11 = vld [vmem:[%s1587_s0 + $0x108] sm:$0xff]  ;;  %900 = vmatprep.subr.bf16.mxu0 %v899_v4  ;;  %v308_v16 = vld [vmem:[%s1587_s0 + $0x18] sm:$0xff]  ;;  %vm26_vm0 = vcmp.lt.s32.totalorder %v1191_v62, 2 }
   0x5   :  { %v933_v13 = vpack.c.bf16 %v338_v11, %v337_v10  ;;  %902 = vmatpush3.bf16.msra.mxu0 %v901_v8  ;;  %v905_v18 = vpack.c.bf16 %v308_v16, %v307_v15  ;;  %v355_v19 = vld [vmem:[%s1587_s0 + $0x190] sm:$0xff]  ;;  %v356_v20 = vld [vmem:[%s1587_s0 + $0x198] sm:$0xff]  ;;  %v325_v24 = vld [vmem:[%s1587_s0 + $0xa0] sm:$0xff] }
   0x6   :  { %932 = vmatprep.subr.bf16.mxu1 %v931_v9  ;;  %v339_v21 = vld [vmem:[%s1587_s0 + $0x110] sm:$0xff]  ;;  %v935_v22 = vpack.c.bf16 %v356_v20, %v355_v19  ;;  %v340_v23 = vld [vmem:[%s1587_s0 + $0x118] sm:$0xff]  ;;  %v326_v25 = vld [vmem:[%s1587_s0 + $0xa8] sm:$0xff]  ;;  %904 = vmatprep.subr.bf16.mxu0 %v903_v17 }
   0x7   :  { %934 = vmatpush3.bf16.msra.mxu1 %v933_v13  ;;  %v937_v26 = vpack.c.bf16 %v340_v23, %v339_v21  ;;  %v907_v27 = vpack.c.bf16 %v326_v25, %v325_v24  ;;  %v309_v28 = vld [vmem:[%s1587_s0 + $0x20] sm:$0xff]  ;;  %v310_v29 = vld [vmem:[%s1587_s0 + $0x28] sm:$0xff]  ;;  %v327_v36 = vld [vmem:[%s1587_s0 + $0xb0] sm:$0xff] }
   0x8   :  { %v357_v30 = vld [vmem:[%s1587_s0 + $0x1a0] sm:$0xff]  ;;  %936 = vmatprep.subr.bf16.mxu1 %v935_v22  ;;  %v358_v31 = vld [vmem:[%s1587_s0 + $0x1a8] sm:$0xff]  ;;  %v909_v34 = vpack.c.bf16 %v310_v29, %v309_v28  ;;  %v328_v37 = vld [vmem:[%s1587_s0 + $0xb8] sm:$0xff] }
   0x9   :  { %v341_v32 = vld [vmem:[%s1587_s0 + $0x120] sm:$0xff]  ;;  %v342_v33 = vld [vmem:[%s1587_s0 + $0x128] sm:$0xff]  ;;  %906 = vmatpush3.bf16.msra.mxu0 %v905_v18  ;;  %v939_v35 = vpack.c.bf16 %v358_v31, %v357_v30  ;;  %v311_v38 = vld [vmem:[%s1587_s0 + $0x30] sm:$0xff]  ;;  %v911_v40 = vpack.c.bf16 %v328_v37, %v327_v36 }
   0xa   :  { %908 = vmatprep.subr.bf16.mxu0 %v907_v27  ;;  %v941_v39 = vpack.c.bf16 %v342_v33, %v341_v32  ;;  %v312_v41 = vld [vmem:[%s1587_s0 + $0x38] sm:$0xff]  ;;  %v359_v42 = vld [vmem:[%s1587_s0 + $0x1b0] sm:$0xff]  ;;  %v329_v47 = vld [vmem:[%s1587_s0 + $0xc0] sm:$0xff] }
   0xb   :  { %938 = vmatpush3.bf16.msra.mxu1 %v937_v26  ;;  %v360_v43 = vld [vmem:[%s1587_s0 + $0x1b8] sm:$0xff]  ;;  %v343_v45 = vld [vmem:[%s1587_s0 + $0x130] sm:$0xff]  ;;  %v330_v49 = vld [vmem:[%s1587_s0 + $0xc8] sm:$0xff]  ;;  %v913_v50 = vpack.c.bf16 %v312_v41, %v311_v38 }
   0xc   :  { %940 = vmatprep.subr.bf16.mxu1 %v939_v35  ;;  %v943_v44 = vpack.c.bf16 %v360_v43, %v359_v42  ;;  %v344_v46 = vld [vmem:[%s1587_s0 + $0x138] sm:$0xff]  ;;  %v361_v51 = vld [vmem:[%s1587_s0 + $0x1c0] sm:$0xff]  ;;  %v362_v52 = vld [vmem:[%s1587_s0 + $0x1c8] sm:$0xff]  ;;  %v915_v54 = vpack.c.bf16 %v330_v49, %v329_v47 }
   0xd   :  { %910 = vmatpush3.bf16.msra.mxu0 %v909_v34  ;;  %v945_v53 = vpack.c.bf16 %v344_v46, %v343_v45  ;;  %v313_v55 = vld [vmem:[%s1587_s0 + $0x40] sm:$0xff]  ;;  %v314_v56 = vld [vmem:[%s1587_s0 + $0x48] sm:$0xff]  ;;  %v947_v58 = vpack.c.bf16 %v362_v52, %v361_v51  ;;  %v331_v60 = vld [vmem:[%s1587_s0 + $0xd0] sm:$0xff] }
   0xe   :  { %912 = vmatprep.subr.bf16.mxu0 %v911_v40  ;;  %v345_v57 = vld [vmem:[%s1587_s0 + $0x140] sm:$0xff]  ;;  %v346_v59 = vld [vmem:[%s1587_s0 + $0x148] sm:$0xff]  ;;  %v332_v61 = vld [vmem:[%s1587_s0 + $0xd8] sm:$0xff]  ;;  %v917_v4 = vpack.c.bf16 %v314_v56, %v313_v55 }
   0xf   :  { %942 = vmatpush3.bf16.msra.mxu1 %v941_v39  ;;  %v315_v63 = vld [vmem:[%s1587_s0 + $0x50] sm:$0xff]  ;;  %v316_v1 = vld [vmem:[%s1587_s0 + $0x58] sm:$0xff]  ;;  %v333_v7 = vld [vmem:[%s1587_s0 + $0xe0] sm:$0xff]  ;;  %v949_v8 = vpack.c.bf16 %v346_v59, %v345_v57  ;;  %v919_v9 = vpack.c.bf16 %v332_v61, %v331_v60 }
  0x10   :  { %944 = vmatprep.subr.bf16.mxu1 %v943_v44  ;;  %v363_v2 = vld [vmem:[%s1587_s0 + $0x1d0] sm:$0xff]  ;;  %v364_v3 = vld [vmem:[%s1587_s0 + $0x1d8] sm:$0xff]  ;;  %v334_v10 = vld [vmem:[%s1587_s0 + $0xe8] sm:$0xff]  ;;  %v921_v20 = vpack.c.bf16 %v316_v1, %v315_v63 }
  0x11   :  { %914 = vmatpush3.bf16.msra.mxu0 %v913_v50  ;;  %v347_v5 = vld [vmem:[%s1587_s0 + $0x150] sm:$0xff]  ;;  %v348_v6 = vld [vmem:[%s1587_s0 + $0x158] sm:$0xff]  ;;  %v1220_v11 = vld [vmem:[%s1587_s0 + $0x60] sm:$0xff]  ;;  %v951_v13 = vpack.c.bf16 %v364_v3, %v363_v2  ;;  %v923_v27 = vpack.c.bf16 %v334_v10, %v333_v7 }
  0x12   :  { %916 = vmatprep.subr.bf16.mxu0 %v915_v54  ;;  %v1225_v12 = vld [vmem:[%s1587_s0 + $0x68] sm:$0xff]  ;;  %v365_v14 = vld [vmem:[%s1587_s0 + $0x1e0] sm:$0xff]  ;;  %v1247_v18 = vld [vmem:[%s1587_s0 + $0xf0] sm:$0xff]  ;;  %v953_v21 = vpack.c.bf16 %v348_v6, %v347_v5 }
  0x13   :  { %946 = vmatpush3.bf16.msra.mxu1 %v945_v53  ;;  %v366_v15 = vld [vmem:[%s1587_s0 + $0x1e8] sm:$0xff]  ;;  %v1236_v16 = vld [vmem:[%s1587_s0 + $0x160] sm:$0xff]  ;;  %v1252_v19 = vld [vmem:[%s1587_s0 + $0xf8] sm:$0xff]  ;;  %v925_v28 = vpack.c.bf16 %v1225_v12, %v1220_v11 }
  0x14   :  { %948 = vmatprep.subr.bf16.mxu1 %v947_v58  ;;  %v1242_v17 = vld [vmem:[%s1587_s0 + $0x168] sm:$0xff]  ;;  %v1257_v22 = vld [vmem:[%s1587_s0 + $0x70] sm:$0xff]  ;;  %v1262_v23 = vld [vmem:[%s1587_s0 + $0x78] sm:$0xff]  ;;  %v955_v33 = vpack.c.bf16 %v366_v15, %v365_v14  ;;  %v927_v41 = vpack.c.bf16 %v1252_v19, %v1247_v18 }
  0x15   :  { %918 = vmatpush3.bf16.msra.mxu0 %v917_v4  ;;  %v1267_v24 = vld [vmem:[%s1587_s0 + $0x1f0] sm:$0xff]  ;;  %v1272_v25 = vld [vmem:[%s1587_s0 + $0x1f8] sm:$0xff]  ;;  %v717_v26 = vld [vmem:[%s1591_s4 + $0x2] sm:$0x3]  ;;  %v957_v40 = vpack.c.bf16 %v1242_v17, %v1236_v16  ;;  %v929_v52 = vpack.c.bf16 %v1262_v23, %v1257_v22 }
  0x16   :  { %920 = vmatprep.subr.bf16.mxu0 %v919_v9  ;;  %v36_v29 = vsel %vm26_vm0, %v717_v26, %v1063_v0  ;;  %v723_v30 = vld [vmem:[%s1591_s4 + $0xe] sm:$0x3]  ;;  %v729_v31 = vld [vmem:[%s1591_s4 + $0x1a] sm:$0x3]  ;;  %v735_v32 = vld [vmem:[%s1591_s4 + $0x26] sm:$0x3]  ;;  %v959_v53 = vpack.c.bf16 %v1272_v25, %v1267_v24 }
  0x17   :  { %950 = vmatpush3.bf16.msra.mxu1 %v949_v8  ;;  %v96_v34 = vsel %vm26_vm0, %v723_v30, %v1063_v0  ;;  %v156_v35 = vsel %vm26_vm0, %v729_v31, %v1063_v0  ;;  %v216_v36 = vsel %vm26_vm0, %v735_v32, %v1063_v0  ;;  %v351_v37 = vld [vmem:[%s1587_s0 + $0x170] sm:$0xff]  ;;  %v352_v38 = vld [vmem:[%s1587_s0 + $0x178] sm:$0xff]  ;;  %v22_v39 = vld [vmem:[%s1591_s4] sm:$0x3] }
  0x18   :  { %952 = vmatprep.subr.bf16.mxu1 %v951_v13  ;;  %v274_v42 = vmax.f32 %v36_v29, %v96_v34  ;;  %v294_v43 = vmax.f32 %v156_v35, %v216_v36  ;;  %v722_v44 = vld [vmem:[%s1591_s4 + $0xc] sm:$0x3]  ;;  %v728_v45 = vld [vmem:[%s1591_s4 + $0x18] sm:$0x3]  ;;  %v734_v46 = vld [vmem:[%s1591_s4 + $0x24] sm:$0x3]  ;;  %v27_v47 = vsel %vm26_vm0, %v22_v39, %v1063_v0  ;;  %v961_v58 = vpack.c.bf16 %v352_v38, %v351_v37 }
  0x19   :  { %922 = vmatpush3.bf16.msra.mxu0 %v921_v20  ;;  %v86_v48 = vsel %vm26_vm0, %v722_v44, %v1063_v0  ;;  %v146_v49 = vsel %vm26_vm0, %v728_v45, %v1063_v0  ;;  %v206_v50 = vsel %vm26_vm0, %v734_v46, %v1063_v0  ;;  %v719_v51 = vld [vmem:[%s1591_s4 + $0x6] sm:$0x3]  ;;  %v725_v55 = vld [vmem:[%s1591_s4 + $0x12] sm:$0x3]  ;;  %v731_v56 = vld [vmem:[%s1591_s4 + $0x1e] sm:$0x3] }
  0x1a   :  { %924 = vmatprep.subr.bf16.mxu0 %v923_v27  ;;  %v300_v54 = vmax.f32 %v274_v42, %v294_v43  ;;  %v737_v57 = vld [vmem:[%s1591_s4 + $0x2a] sm:$0x3]  ;;  %v385_v59 = vld [vmem:[%s1587_s0 + $0x280] sm:$0xff]  ;;  %v56_v61 = vsel %vm26_vm0, %v719_v51, %v1063_v0  ;;  %v116_v63 = vsel %vm26_vm0, %v725_v55, %v1063_v0  ;;  %v176_v1 = vsel %vm26_vm0, %v731_v56, %v1063_v0  ;;  %v724_v7 = vld [vmem:[%s1591_s4 + $0x10] sm:$0x3] }
  0x1b   :  { %954 = vmatpush3.bf16.msra.mxu1 %v953_v21  ;;  %v386_v60 = vld [vmem:[%s1587_s0 + $0x288] sm:$0xff]  ;;  %v718_v2 = vld [vmem:[%s1591_s4 + $0x4] sm:$0x3]  ;;  %v273_v3 = vmax.f32 %v27_v47, %v86_v48  ;;  %v293_v4 = vmax.f32 %v146_v49, %v206_v50  ;;  %v236_v5 = vsel %vm26_vm0, %v737_v57, %v1063_v0  ;;  %v276_v6 = vmax.f32 %v56_v61, %v116_v63  ;;  %v730_v8 = vld [vmem:[%s1591_s4 + $0x1c] sm:$0x3] }
  0x1c   :  { %956 = vmatprep.subr.bf16.mxu1 %v955_v33  ;;  %472 = vmatprep.mubr.f32.mxu0 %v300_v54  ;;  %v736_v9 = vld [vmem:[%s1591_s4 + $0x28] sm:$0x3]  ;;  %v296_v10 = vmax.f32 %v176_v1, %v236_v5  ;;  %v46_v11 = vsel %vm26_vm0, %v718_v2, %v1063_v0  ;;  %v106_v12 = vsel %vm26_vm0, %v724_v7, %v1063_v0  ;;  %v369_v15 = vld [vmem:[%s1587_s0 + $0x200] sm:$0xff]  ;;  %v387_v21 = vld [vmem:[%s1587_s0 + $0x290] sm:$0xff] }
  0x1d   :  { %926 = vmatpush3.bf16.msra.mxu0 %v925_v28  ;;  %v166_v13 = vsel %vm26_vm0, %v730_v8, %v1063_v0  ;;  %v963_v14 = vpack.c.bf16 %v386_v60, %v385_v59  ;;  %v370_v16 = vld [vmem:[%s1587_s0 + $0x208] sm:$0xff]  ;;  %v226_v17 = vsel %vm26_vm0, %v736_v9, %v1063_v0  ;;  %v275_v18 = vmax.f32 %v46_v11, %v106_v12  ;;  %v388_v22 = vld [vmem:[%s1587_s0 + $0x298] sm:$0xff]  ;;  %v371_v27 = vld [vmem:[%s1587_s0 + $0x210] sm:$0xff] }
  0x1e   :  { %928 = vmatprep.subr.bf16.mxu0 %v927_v41  ;;  %v302_v19 = vmax.f32 %v276_v6, %v296_v10  ;;  %v295_v20 = vmax.f32 %v166_v13, %v226_v17  ;;  %v299_v23 = vmax.f32 %v273_v3, %v293_v4  ;;  %v965_v24 = vpack.c.bf16 %v370_v16, %v369_v15  ;;  %v372_v28 = vld [vmem:[%s1587_s0 + $0x218] sm:$0xff]  ;;  %v389_v29 = vld [vmem:[%s1587_s0 + $0x2a0] sm:$0xff]  ;;  %v390_v30 = vld [vmem:[%s1587_s0 + $0x2a8] sm:$0xff] }
  0x1f   :  { %958 = vmatpush3.bf16.msra.mxu1 %v957_v40  ;;  %v967_v26 = vpack.c.bf16 %v388_v22, %v387_v21  ;;  %v969_v31 = vpack.c.bf16 %v372_v28, %v371_v27  ;;  %v373_v32 = vld [vmem:[%s1587_s0 + $0x220] sm:$0xff]  ;;  %v374_v33 = vld [vmem:[%s1587_s0 + $0x228] sm:$0xff]  ;;  %v971_v34 = vpack.c.bf16 %v390_v30, %v389_v29  ;;  %v391_v35 = vld [vmem:[%s1587_s0 + $0x2b0] sm:$0xff]  ;;  %v1022_v27 = vmov 0.0|0.0  }
  0x20   :  { %960 = vmatprep.subr.bf16.mxu1 %v959_v53  ;;  %542 = vmatprep.mubr.f32.mxu1 %v302_v19  ;;  %v301_v25 = vmax.f32 %v275_v18, %v295_v20  ;;  %v721_v36 = vld [vmem:[%s1591_s4 + $0xa] sm:$0x3]  ;;  %v727_v37 = vld [vmem:[%s1591_s4 + $0x16] sm:$0x3]  ;;  %v392_v38 = vld [vmem:[%s1587_s0 + $0x2b8] sm:$0xff]  ;;  %v973_v46 = vpack.c.bf16 %v374_v33, %v373_v32 }
  0x21   :  { %930 = vmatpush3.bf16.msra.mxu0 %v929_v52  ;;  %v76_v39 = vsel %vm26_vm0, %v721_v36, %v1063_v0  ;;  %v136_v40 = vsel %vm26_vm0, %v727_v37, %v1063_v0  ;;  %v733_v41 = vld [vmem:[%s1591_s4 + $0x22] sm:$0x3]  ;;  %v739_v42 = vld [vmem:[%s1591_s4 + $0x2e] sm:$0x3]  ;;  %v975_v48 = vpack.c.bf16 %v392_v38, %v391_v35  ;;  %v375_v49 = vld [vmem:[%s1587_s0 + $0x230] sm:$0xff] }
  0x22   :  { %964 = vmatprep.subr.bf16.mxu0 %v963_v14  ;;  %v196_v43 = vsel %vm26_vm0, %v733_v41, %v1063_v0  ;;  %v256_v44 = vsel %vm26_vm0, %v739_v42, %v1063_v0  ;;  %v278_v45 = vmax.f32 %v76_v39, %v136_v40  ;;  %v376_v50 = vld [vmem:[%s1587_s0 + $0x238] sm:$0xff]  ;;  %v393_v51 = vld [vmem:[%s1587_s0 + $0x2c0] sm:$0xff]  ;;  %v394_v52 = vld [vmem:[%s1587_s0 + $0x2c8] sm:$0xff] }
  0x23   :  { %962 = vmatpush3.bf16.msra.mxu1 %v961_v58  ;;  %v298_v47 = vmax.f32 %v196_v43, %v256_v44  ;;  %v977_v54 = vpack.c.bf16 %v376_v50, %v375_v49  ;;  %v979_v55 = vpack.c.bf16 %v394_v52, %v393_v51  ;;  %v377_v56 = vld [vmem:[%s1587_s0 + $0x240] sm:$0xff]  ;;  %v378_v57 = vld [vmem:[%s1587_s0 + $0x248] sm:$0xff]  ;;  %v395_v58 = vld [vmem:[%s1587_s0 + $0x2d0] sm:$0xff]  ;;  %v1024_v49 = vmov 0.0  }
  0x24   :  { %473 = vmatmul.mubr.f32.vlgmr.msra.gmra.mrb[0].mxu0 %v299_v23  ;;  %v396_v59 = vld [vmem:[%s1587_s0 + $0x2d8] sm:$0xff]  ;;  %v981_v60 = vpack.c.bf16 %v378_v57, %v377_v56  ;;  %v379_v63 = vld [vmem:[%s1587_s0 + $0x250] sm:$0xff]  ;;  %v397_v2 = vld [vmem:[%s1587_s0 + $0x2e0] sm:$0xff]  ;;  %995 = vmatprep.subr.bf16.mxu1 %v1022_v27 }
  0x25   :  { %966 = vmatpush3.bf16.msra.mxu0 %v965_v24  ;;  %v304_v53 = vmax.f32 %v278_v45, %v298_v47  ;;  %v983_v61 = vpack.c.bf16 %v396_v59, %v395_v58  ;;  %v380_v1 = vld [vmem:[%s1587_s0 + $0x258] sm:$0xff]  ;;  %v398_v3 = vld [vmem:[%s1587_s0 + $0x2e8] sm:$0xff]  ;;  %v381_v5 = vld [vmem:[%s1587_s0 + $0x260] sm:$0xff] }
  0x26   :  { %543 = vmatmul.mubr.f32.vlgmr.msra.gmra.mrb[0].mxu1 %v301_v25  ;;  %968 = vmatprep.subr.bf16.mxu0 %v967_v26  ;;  %v985_v4 = vpack.c.bf16 %v380_v1, %v379_v63  ;;  %v382_v6 = vld [vmem:[%s1587_s0 + $0x268] sm:$0xff]  ;;  %v987_v8 = vpack.c.bf16 %v398_v3, %v397_v2  ;;  %v726_v9 = vld [vmem:[%s1591_s4 + $0x14] sm:$0x3]  ;;  %v732_v10 = vld [vmem:[%s1591_s4 + $0x20] sm:$0x3] }
  0x27   :  { %612 = vmatprep.mubr.f32.mxu0 %v304_v53  ;;  %v720_v7 = vld [vmem:[%s1591_s4 + $0x8] sm:$0x3]  ;;  %v738_v11 = vld [vmem:[%s1591_s4 + $0x2c] sm:$0x3]  ;;  %v399_v12 = vld [vmem:[%s1587_s0 + $0x2f0] sm:$0xff]  ;;  %v989_v14 = vpack.c.bf16 %v382_v6, %v381_v5  ;;  %v126_v16 = vsel %vm26_vm0, %v726_v9, %v1063_v0  ;;  %v186_v17 = vsel %vm26_vm0, %v732_v10, %v1063_v0  ;;  %896 = vmatprep.mubr.msk.f32.mxu1 %vm1023_vm1, %v1024_v49 }
  0x28   :  { %v400_v13 = vld [vmem:[%s1587_s0 + $0x2f8] sm:$0xff]  ;;  %v66_v15 = vsel %vm26_vm0, %v720_v7, %v1063_v0  ;;  %v246_v18 = vsel %vm26_vm0, %v738_v11, %v1063_v0  ;;  %v383_v20 = vld [vmem:[%s1587_s0 + $0x270] sm:$0xff]  ;;  %v619_v0 = vld [vmem:[%s1589_s2] sm:$0xff] }
  0x29   :  { %970 = vmatpush3.bf16.msra.mxu0 %v969_v31  ;;  %v991_v19 = vpack.c.bf16 %v400_v13, %v399_v12  ;;  %v384_v21 = vld [vmem:[%s1587_s0 + $0x278] sm:$0xff]  ;;  %v277_v22 = vmax.f32 %v66_v15, %v126_v16  ;;  %v297_v23 = vmax.f32 %v186_v17, %v246_v18  ;;  %v620_v62 = vld [vmem:[%s1589_s2 + $0x8] sm:$0xff]  ;;  %v621_v26 = vld [vmem:[%s1589_s2 + $0x10] sm:$0xff] }
  0x2a   :  { %972 = vmatprep.subr.bf16.mxu0 %v971_v34  ;;  %v993_v24 = vpack.c.bf16 %v384_v21, %v383_v20  ;;  %v996_v28 = vpack.c.bf16 %v620_v62, %v619_v0  ;;  %v622_v29 = vld [vmem:[%s1589_s2 + $0x18] sm:$0xff]  ;;  %v623_v31 = vld [vmem:[%s1589_s2 + $0x20] sm:$0xff]  ;;  %v624_v32 = vld [vmem:[%s1589_s2 + $0x28] sm:$0xff] }
  0x2b   :  { %v303_v25 = vmax.f32 %v277_v22, %v297_v23  ;;  %v999_v30 = vpack.c.bf16 %v622_v29, %v621_v26  ;;  %v1002_v33 = vpack.c.bf16 %v624_v32, %v623_v31  ;;  %v625_v34 = vld [vmem:[%s1589_s2 + $0x30] sm:$0xff]  ;;  %v626_v35 = vld [vmem:[%s1589_s2 + $0x38] sm:$0xff]  ;;  %v627_v37 = vld [vmem:[%s1589_s2 + $0x40] sm:$0xff] }
  0x2c   :  { %997 = vmatpush3.bf16.msra.mxu1 %v996_v28  ;;  %v1005_v36 = vpack.c.bf16 %v626_v35, %v625_v34  ;;  %v628_v38 = vld [vmem:[%s1589_s2 + $0x48] sm:$0xff]  ;;  %v629_v40 = vld [vmem:[%s1589_s2 + $0x50] sm:$0xff]  ;;  %v630_v41 = vld [vmem:[%s1589_s2 + $0x58] sm:$0xff] }
  0x2d   :  { %974 = vmatpush3.bf16.msra.mxu0 %v973_v46  ;;  %998 = vmatprep.subr.bf16.mxu1 %v1022_v27  ;;  %v1008_v39 = vpack.c.bf16 %v628_v38, %v627_v37  ;;  %v1011_v42 = vpack.c.bf16 %v630_v41, %v629_v40  ;;  %v631_v43 = vld [vmem:[%s1589_s2 + $0x60] sm:$0xff]  ;;  %v632_v44 = vld [vmem:[%s1589_s2 + $0x68] sm:$0xff]  ;;  %v633_v46 = vld [vmem:[%s1589_s2 + $0x70] sm:$0xff] }
  0x2e   :  { %976 = vmatprep.subr.bf16.mxu0 %v975_v48  ;;  %v1014_v45 = vpack.c.bf16 %v632_v44, %v631_v43  ;;  %v634_v47 = vld [vmem:[%s1589_s2 + $0x78] sm:$0xff]  ;;  %v740_v51 = vld [vmem:[%s1588_s1] ss:$0 sm:$0xff] }
  0x2f   :  { %v1017_v48 = vpack.c.bf16 %v634_v47, %v633_v46  ;;  %v741_v2 = vld [vmem:[%s1590_s3] ss:$0 sm:$0xff] }
  0x30   :  { %1000 = vmatpush3.bf16.msra.mxu1 %v999_v30 }
  0x31   :  { %978 = vmatpush3.bf16.msra.mxu0 %v977_v54  ;;  %1001 = vmatprep.subr.bf16.mxu1 %v1022_v27 }
  0x32   :  { %980 = vmatprep.subr.bf16.mxu0 %v979_v55 }
  0x34   :  { %1003 = vmatpush3.bf16.msra.mxu1 %v1002_v33 }
  0x35   :  { %982 = vmatpush3.bf16.msra.mxu0 %v981_v60  ;;  %1004 = vmatprep.subr.bf16.mxu1 %v1022_v27 }
  0x36   :  { %984 = vmatprep.subr.bf16.mxu0 %v983_v61 }
  0x38   :  { %1006 = vmatpush3.bf16.msra.mxu1 %v1005_v36 }
  0x39   :  { %986 = vmatpush3.bf16.msra.mxu0 %v985_v4  ;;  %1007 = vmatprep.subr.bf16.mxu1 %v1022_v27 }
  0x3a   :  { %988 = vmatprep.subr.bf16.mxu0 %v987_v8 }
  0x3c   :  { %1009 = vmatpush3.bf16.msra.mxu1 %v1008_v39 }
  0x3d   :  { %990 = vmatpush3.bf16.msra.mxu0 %v989_v14  ;;  %1010 = vmatprep.subr.bf16.mxu1 %v1022_v27 }
  0x3e   :  { %992 = vmatprep.subr.bf16.mxu0 %v991_v19 }
  0x40   :  { %1012 = vmatpush3.bf16.msra.mxu1 %v1011_v42 }
  0x41   :  { %994 = vmatpush3.bf16.msra.mxu0 %v993_v24  ;;  %1013 = vmatprep.subr.bf16.mxu1 %v1022_v27 }
  0x44   :  { %613 = vmatmul.mubr.f32.vlgmr.msra.gmra.mrb[2].mxu0 %v303_v25  ;;  %1015 = vmatpush3.bf16.msra.mxu1 %v1014_v45 }
  0x45   :  { %1016 = vmatprep.subr.bf16.mxu1 %v1022_v27 }
  0x48   :  { %1018 = vmatpush3.bf16.msra.mxu1 %v1017_v48 }
  0xf7   :  { %v774_v50 = vpop.f32.mrb[0].mxu0 }
  0xf8   :  { %v775_v52 = vpop.f32.mrb[1].mxu0 }
  0xf9   :  { %v809_v53 = vpop.f32.mrb[0].mxu1  ;;  %v776_v54 = vadd.f32 %v775_v52, %v774_v50 }
  0xfa   :  { %v810_v55 = vpop.f32.mrb[1].mxu1 }
  0xfb   :  { %v811_v56 = vadd.f32 %v810_v55, %v809_v53  ;;  %v475_v57 = vadd.f32 %v776_v54, %v740_v51 }
  0xfd   :  { %v545_v58 = vadd.f32 %v811_v56, %v475_v57 }
 0x117   :  { %v844_v59 = vpop.f32.mrb[2].mxu0 }
 0x118   :  { %v845_v60 = vpop.f32.mrb[3].mxu0 }
 0x119   :  { %v846_v61 = vadd.f32 %v845_v60, %v844_v59 }
 0x11b   :  { %v615_v63 = vadd.f32 %v846_v61, %v545_v58 }
 0x11d   :  { %v618_v1 = vmax.f32 %v615_v63, 0.0 }
 0x11f   :  { %897 = vmatmul.mubr.f32.vlgmr.msra.gmra.mrb[2].mxu1 %v618_v1 }
 0x1f2   :  { %v708_v3 = vpop.f32.mrb[2].mxu1 }
 0x1f3   :  { %v709_v4 = vadd.f32 %v741_v2, %v708_v3  ;;  %v898_v5 = vpop.f32.mrb[3].mxu1 }
 0x1f5   :  { %712 = vst [vmem:[%s1593_s6] sm:$0xff] %v709_v4 }

</bundles_post_ra>
